<compile_context>
chip_gen: v7x
topology: tpu7x:2x2x1
jax: 0.10.0
libtpu: 0.0.40
codegen_flags: <defaults>
</compile_context>

<pallas_src>
import functools

import jax
import jax.numpy as jnp
from jax.experimental import pallas as pl
from jax.experimental.pallas import tpu as pltpu

KH, KW = 4, 4
STRIDE = 2
PAD = 1
BN_EPS = 1e-5
LEAKY_SLOPE = 0.2


def _round_up(x, m):
    return (x + m - 1) // m * m


def _pick_tile(total_units, unit, max_rows, want_steps=2):
    """Pick a row-tile = k*unit with k | total_units, tile % 8 == 0, tile <= max_rows.

    Prefers tilings that give >= want_steps grid steps (keeps both v7x TensorCores
    busy).  Falls back to one full block, which is always a legal BlockSpec.
    """
    multi, single = 0, 0
    for k in range(1, total_units + 1):
        if total_units % k:
            continue
        tile = k * unit
        if tile % 8 != 0 or tile > max_rows:
            continue
        if total_units // k >= want_steps:
            multi = max(multi, tile)
        single = max(single, tile)
    if multi:
        return multi
    if single:
        return single
    return total_units * unit  # one full block


# ---------------------------------------------------------------------------
# Phase 1: conv via two tap matmuls (+ row shift) + per-tile BN partial stats.
# Rows are the flattened (n, h_out, w'=0..W_out) index; w'==W_out rows are
# "garbage" rows that make the dw=1 column shift a pure one-row shift.
# ---------------------------------------------------------------------------
def _conv_stats_kernel(taps_ref, w0_ref, w1_ref, y_ref, psum_ref, psq_ref, *, w1_cols):
    tb = taps_ref.shape[0]
    a = taps_ref[...]                                              # (TB, 8*C_in) bf16

    # dw=0 taps use this row's inputs; dw=1 taps use the next row's inputs,
    # realized as a one-row shift of the second partial product.  The wrapped
    # last row only lands on a discarded garbage row (TB is a multiple of W1).
    acc0 = jnp.dot(a, w0_ref[...], preferred_element_type=jnp.float32)
    acc1 = jnp.dot(a, w1_ref[...], preferred_element_type=jnp.float32)
    acc1_shift = jnp.concatenate([acc1[1:, :], acc1[:1, :]], axis=0)
    acc = acc0 + acc1_shift                                        # (TB, C_pad) f32

    # Exclude the garbage rows (w' == W_out) from the BatchNorm statistics.
    rows = jax.lax.broadcasted_iota(jnp.int32, (tb, 1), 0)
    valid = (rows % w1_cols) != (w1_cols - 1)
    accv = jnp.where(valid, acc, 0.0)

    psum_ref[...] = jnp.sum(accv, axis=0, keepdims=True).reshape(1, 1, -1)
    psq_ref[...] = jnp.sum(accv * accv, axis=0, keepdims=True).reshape(1, 1, -1)

    # bf16 intermediate store; stats above were taken from the f32 accumulator.
    y_ref[...] = acc.astype(jnp.bfloat16)


# ---------------------------------------------------------------------------
# Phase 2: fused BatchNorm (precomputed scale/shift) + LeakyReLU(0.2).
# ---------------------------------------------------------------------------
def _bn_lrelu_kernel(y_ref, scale_ref, shift_ref, o_ref):
    y = y_ref[...].astype(jnp.float32) * scale_ref[...] + shift_ref[...]
    o_ref[...] = jnp.where(y >= 0.0, y, LEAKY_SLOPE * y)


@functools.partial(jax.jit, static_argnames=("dropout",))
def unet_down_forward(x_nchw, weight, bias, gamma, beta, dropout=0.0):
    """Pallas implementation of UnetDown.forward (norm=True path).

    x_nchw: (N, C_in, H, W) f32;  weight: (C_out, C_in, 4, 4);  bias: (C_out,)
    gamma, beta: (C_out,) BatchNorm affine params.
    Returns (N, C_out, H//2, W//2) f32.
    """
    del bias      # exactly absorbed by train-mode BatchNorm mean subtraction.
    del dropout   # identity for p=0.0; see TODO(synk) in the header.

    c_out, c_in = weight.shape[0], weight.shape[1]
    n, _, h, w = x_nchw.shape
    h_out = (h + 2 * PAD - KH) // STRIDE + 1
    w_out = (w + 2 * PAD - KW) // STRIDE + 1
    nh = n * h_out
    w1_cols = w_out + 1            # one extra ("garbage") column per output row
    m_true = nh * w_out            # real output rows (BN denominator)
    m_prime = nh * w1_cols         # rows including the garbage column
    k8 = 8 * c_in                  # contraction depth per tap matmul
    c_pad = _round_up(max(c_out, 1), 128)   # lane-dense output stores

    # ---- space-to-depth re-pack of the input (glue; ~2.2x input bytes) -----
    x_nhwc = jnp.transpose(x_nchw, (0, 2, 3, 1)).astype(jnp.bfloat16)
    xp = jnp.pad(x_nhwc, ((0, 0), (PAD, PAD), (PAD, PAD), (0, 0)))
    taps = []
    for kh in range(KH):
        for wp in range(2):        # column parity
            taps.append(xp[:, kh:kh + STRIDE * h_out:STRIDE,
                           wp:wp + STRIDE * w1_cols:STRIDE, :])
    taps = jnp.concatenate(taps, axis=-1).reshape(m_prime, k8)     # (M', 8*C_in) bf16

    # ---- weights: two (8*C_in, C_pad) slabs (dw=0 and dw=1 column taps) ----
    wt = jnp.transpose(weight, (2, 3, 1, 0))                       # (KH, KW, C_in, C_out)
    w_dw0 = jnp.pad(wt[:, 0:2].reshape(k8, c_out),
                    ((0, 0), (0, c_pad - c_out))).astype(jnp.bfloat16)
    w_dw1 = jnp.pad(wt[:, 2:4].reshape(k8, c_out),
                    ((0, 0), (0, c_pad - c_out))).astype(jnp.bfloat16)

    # ---- tile selection + VMEM limit derived from the tile working set -----
    def _vmem(rows, cols, itemsize, sublane):
        return _round_up(rows, sublane) * _round_up(cols, 128) * itemsize

    def _ws_bytes(tb_rows, t2_rows):
        p1 = 2 * (_vmem(tb_rows, k8, 2, 16)          # taps block (bf16), double-buffered
                  + 2 * _vmem(k8, c_pad, 2, 16)      # w_dw0 + w_dw1 (bf16)
                  + _vmem(tb_rows, c_pad, 2, 16)     # y block (bf16)
                  + 2 * _vmem(1, c_pad, 4, 8))       # stat partials
        p1 += 2 * _vmem(tb_rows, c_pad, 4, 8)        # f32 accumulators
        p2 = 2 * (_vmem(t2_rows, c_pad, 2, 16)       # y block (bf16)
                  + _vmem(t2_rows, c_pad, 4, 8)      # out block (f32)
                  + 2 * _vmem(1, c_pad, 4, 8))       # scale/shift
        return max(p1, p2)

    budget = 36 << 20                                 # headroom within v7x's 64 MiB VMEM
    max_rows1 = 2048
    while True:
        tb = _pick_tile(nh, w1_cols, max_rows1)
        tile2 = _pick_tile(m_prime, 1, 2 * max_rows1)
        ws = _ws_bytes(tb, tile2)
        if ws <= budget or max_rows1 <= 8:
            break
        max_rows1 //= 2
    needed = int(1.4 * ws) + (2 << 20)
    vmem_limit = needed if needed > (40 << 20) else max(needed, 16 << 20)

    cparams = pltpu.CompilerParams(
        dimension_semantics=("parallel",),
        vmem_limit_bytes=vmem_limit,
    )

    # ---- phase 1: conv (two tap matmuls + shift) + BN stat partials --------
    g1 = m_prime // tb
    y2d, part_sum, part_sq = pl.pallas_call(
        functools.partial(_conv_stats_kernel, w1_cols=w1_cols),
        grid=(g1,),
        in_specs=[
            pl.BlockSpec((tb, k8), lambda i: (i, 0)),        # taps tile
            pl.BlockSpec((k8, c_pad), lambda i: (0, 0)),     # dw=0 weights (resident)
            pl.BlockSpec((k8, c_pad), lambda i: (0, 0)),     # dw=1 weights (resident)
        ],
        out_specs=[
            pl.BlockSpec((tb, c_pad), lambda i: (i, 0)),     # conv output tile (bf16)
            pl.BlockSpec((1, 1, c_pad), lambda i: (i, 0, 0)),
            pl.BlockSpec((1, 1, c_pad), lambda i: (i, 0, 0)),
        ],
        out_shape=[
            jax.ShapeDtypeStruct((m_prime, c_pad), jnp.bfloat16),
            jax.ShapeDtypeStruct((g1, 1, c_pad), jnp.float32),
            jax.ShapeDtypeStruct((g1, 1, c_pad), jnp.float32),
        ],
        compiler_params=cparams,
    )(taps, w_dw0, w_dw1)

    # ---- tiny XLA reduction: fold BN stats into scale/shift ----------------
    sums = jnp.sum(part_sum[:, 0, :], axis=0)
    sumsq = jnp.sum(part_sq[:, 0, :], axis=0)
    mean = sums / m_true
    var = jnp.maximum(sumsq / m_true - mean * mean, 0.0)   # biased, PyTorch train-mode
    rstd = jax.lax.rsqrt(var + BN_EPS)
    g_pad = jnp.pad(gamma.astype(jnp.float32), (0, c_pad - c_out))
    b_pad = jnp.pad(beta.astype(jnp.float32), (0, c_pad - c_out))
    scale = (g_pad * rstd).reshape(1, c_pad)
    shift = (b_pad - mean * g_pad * rstd).reshape(1, c_pad)

    # ---- phase 2: BN apply + LeakyReLU --------------------------------------
    g2 = m_prime // tile2
    out2d = pl.pallas_call(
        _bn_lrelu_kernel,
        grid=(g2,),
        in_specs=[
            pl.BlockSpec((tile2, c_pad), lambda i: (i, 0)),
            pl.BlockSpec((1, c_pad), lambda i: (0, 0)),
            pl.BlockSpec((1, c_pad), lambda i: (0, 0)),
        ],
        out_specs=pl.BlockSpec((tile2, c_pad), lambda i: (i, 0)),
        out_shape=jax.ShapeDtypeStruct((m_prime, c_pad), jnp.float32),
        compiler_params=cparams,
    )(y2d, scale, shift)

    # Discard the garbage column / lane padding and return NCHW (module layout).
    # TODO(synk): returning NHWC (channels on lanes) would save a full memory pass.
    out = out2d.reshape(n, h_out, w1_cols, c_pad)[:, :, :w_out, :c_out]
    return jnp.transpose(out, (0, 3, 1, 2))


def _reference(x_nchw, weight, bias, gamma, beta):
    """Pure-JAX f32 reference (conv + bias + train-mode BN + LeakyReLU)."""
    y = jax.lax.conv_general_dilated(
        x_nchw, weight, window_strides=(STRIDE, STRIDE),
        padding=((PAD, PAD), (PAD, PAD)),
        dimension_numbers=("NCHW", "OIHW", "NCHW"))
    y = y + bias.reshape(1, -1, 1, 1)
    mean = jnp.mean(y, axis=(0, 2, 3), keepdims=True)
    var = jnp.mean((y - mean) ** 2, axis=(0, 2, 3), keepdims=True)
    yhat = (y - mean) * jax.lax.rsqrt(var + BN_EPS)
    y = gamma.reshape(1, -1, 1, 1) * yhat + beta.reshape(1, -1, 1, 1)
    return jnp.where(y >= 0.0, y, LEAKY_SLOPE * y)


if __name__ == "__main__":
    key = jax.random.PRNGKey(0)
    k_x, k_w, k_b, k_g, k_be = jax.random.split(key, 5)

    N, C_IN, H, W = 2, 4, 16, 16
    C_OUT = 8

    x = jax.random.normal(k_x, (N, C_IN, H, W), dtype=jnp.float32)
    weight = 0.1 * jax.random.normal(k_w, (C_OUT, C_IN, KH, KW), dtype=jnp.float32)
    bias = 0.1 * jax.random.normal(k_b, (C_OUT,), dtype=jnp.float32)
    gamma = 1.0 + 0.1 * jax.random.normal(k_g, (C_OUT,), dtype=jnp.float32)
    beta = 0.1 * jax.random.normal(k_be, (C_OUT,), dtype=jnp.float32)

    out = unet_down_forward(x, weight, bias, gamma, beta, dropout=0.0)
    out = jax.block_until_ready(out)

    ref = jax.block_until_ready(_reference(x, weight, bias, gamma, beta))
    assert out.shape == (N, C_OUT, H // 2, W // 2), out.shape
    # bf16 matmul operands + bf16 conv intermediate -> looser tolerance than pure f32.
    max_err = float(jnp.max(jnp.abs(out - ref)))
    assert max_err < 5e-2, max_err

    print("KERNEL_OK")
</pallas_src>

<mosaic_0001>
module attributes {stable_mosaic.version = 11 : i64} {
  func.func @_conv_stats_kernel(%arg0: i32, %arg1: memref<72x32xbf16, #tpu.memory_space<vmem>>, %arg2: memref<32x128xbf16, #tpu.memory_space<vmem>>, %arg3: memref<32x128xbf16, #tpu.memory_space<vmem>>, %arg4: memref<72x128xbf16, #tpu.memory_space<vmem>>, %arg5: memref<1x1x128xf32, #tpu.memory_space<vmem>>, %arg6: memref<1x1x128xf32, #tpu.memory_space<vmem>>) attributes {dimension_semantics = [#tpu.dimension_semantics<parallel>], iteration_bounds = array<i64: 2>, scalar_prefetch = 0 : i64, scratch_operands = 0 : i64, tpu.core_type = #tpu.core_type<tc>, window_params = [{transform_indices = @transform_0, window_bounds = array<i64: 72, 32>}, {pipeline_mode = #tpu.pipeline_mode<synchronous>, transform_indices = @transform_1, window_bounds = array<i64: 32, 128>}, {pipeline_mode = #tpu.pipeline_mode<synchronous>, transform_indices = @transform_2, window_bounds = array<i64: 32, 128>}, {transform_indices = @transform_3, window_bounds = array<i64: 72, 128>}, {transform_indices = @transform_4, window_bounds = array<i64: 1, 1, 128>}, {transform_indices = @transform_5, window_bounds = array<i64: 1, 1, 128>}]} {
    %c0 = arith.constant 0 : index
    %c0_0 = arith.constant 0 : index
    %0 = vector.load %arg1[%c0, %c0_0] : memref<72x32xbf16, #tpu.memory_space<vmem>>, vector<72x32xbf16>
    %c0_1 = arith.constant 0 : index
    %c0_2 = arith.constant 0 : index
    %1 = vector.load %arg2[%c0_1, %c0_2] : memref<32x128xbf16, #tpu.memory_space<vmem>>, vector<32x128xbf16>
    %cst = arith.constant dense<0.000000e+00> : vector<72x128xf32>
    %2 = tpu.matmul %0, %1, %cst {dimension_numbers = #tpu.dot_dimension_numbers<[1], [0], [0], [1], [0, 0, 1, 1], [], []>} : vector<72x32xbf16>, vector<32x128xbf16>, vector<72x128xf32> -> vector<72x128xf32>
    %c0_3 = arith.constant 0 : index
    %c0_4 = arith.constant 0 : index
    %3 = vector.load %arg3[%c0_3, %c0_4] : memref<32x128xbf16, #tpu.memory_space<vmem>>, vector<32x128xbf16>
    %cst_5 = arith.constant dense<0.000000e+00> : vector<72x128xf32>
    %4 = tpu.matmul %0, %3, %cst_5 {dimension_numbers = #tpu.dot_dimension_numbers<[1], [0], [0], [1], [0, 0, 1, 1], [], []>} : vector<72x32xbf16>, vector<32x128xbf16>, vector<72x128xf32> -> vector<72x128xf32>
    %5 = vector.extract_strided_slice %4 {offsets = [1, 0], sizes = [71, 128], strides = [1, 1]} : vector<72x128xf32> to vector<71x128xf32>
    %6 = vector.extract_strided_slice %4 {offsets = [0, 0], sizes = [1, 128], strides = [1, 1]} : vector<72x128xf32> to vector<1x128xf32>
    %7 = tpu.concatenate %5, %6 in 0 : vector<71x128xf32>, vector<1x128xf32> -> vector<72x128xf32>
    %8 = arith.addf %2, %7 : vector<72x128xf32>
    %9 = tpu.iota {dimensions = array<i32: 0>} : vector<72x1xi32>
    %c9_i32 = arith.constant 9 : i32
    %c0_i32 = arith.constant 0 : i32
    %10 = arith.cmpi eq, %c9_i32, %c0_i32 : i32
    %c1_i32 = arith.constant 1 : i32
    %11 = arith.select %10, %c1_i32, %c9_i32 : i32
    %12 = vector.broadcast %11 : i32 to vector<72x1xi32>
    %13 = arith.remsi %9, %12 : vector<72x1xi32>
    %c0_i32_6 = arith.constant 0 : i32
    %14 = vector.broadcast %c0_i32_6 : i32 to vector<72x1xi32>
    %15 = arith.cmpi ne, %13, %14 : vector<72x1xi32>
    %c0_i32_7 = arith.constant 0 : i32
    %16 = vector.broadcast %c0_i32_7 : i32 to vector<72x1xi32>
    %17 = arith.cmpi slt, %13, %16 : vector<72x1xi32>
    %c0_i32_8 = arith.constant 0 : i32
    %18 = arith.cmpi slt, %11, %c0_i32_8 : i32
    %19 = vector.broadcast %18 : i1 to vector<72x1xi1>
    %20 = vector.broadcast %19 : vector<72x1xi1> to vector<72x1xi1>
    %21 = arith.xori %17, %20 : vector<72x1xi1>
    %22 = arith.andi %21, %15 : vector<72x1xi1>
    %23 = vector.broadcast %11 : i32 to vector<72x1xi32>
    %24 = arith.addi %13, %23 : vector<72x1xi32>
    %25 = arith.select %22, %24, %13 : vector<72x1xi1>, vector<72x1xi32>
    %c8_i32 = arith.constant 8 : i32
    %26 = vector.broadcast %c8_i32 : i32 to vector<72x1xi32>
    %27 = arith.cmpi ne, %25, %26 : vector<72x1xi32>
    %cst_9 = arith.constant 0.000000e+00 : f32
    %28 = vector.shape_cast %27 : vector<72x1xi1> to vector<72x1xi1>
    %29 = vector.broadcast %28 : vector<72x1xi1> to vector<72x128xi1>
    %30 = vector.broadcast %cst_9 : f32 to vector<72x128xf32>
    %31 = arith.select %29, %8, %30 : vector<72x128xi1>, vector<72x128xf32>
    %cst_10 = arith.constant dense<0.000000e+00> : vector<128xf32>
    %32 = vector.multi_reduction <add>, %31, %cst_10 [0] : vector<72x128xf32> to vector<128xf32>
    %33 = vector.shape_cast %32 : vector<128xf32> to vector<1x128xf32>
    %34 = vector.shape_cast %33 : vector<1x128xf32> to vector<1x1x128xf32>
    %c0_11 = arith.constant 0 : index
    %c0_12 = arith.constant 0 : index
    %c0_13 = arith.constant 0 : index
    %35 = vector.load %arg5[%c0_11, %c0_12, %c0_13] : memref<1x1x128xf32, #tpu.memory_space<vmem>>, vector<1x1x128xf32>
    tpu.vector_store %arg5[%c0_11, %c0_12, %c0_13], %34 {strides = array<i32>} : memref<1x1x128xf32, #tpu.memory_space<vmem>>, vector<1x1x128xf32>,
    %36 = arith.mulf %31, %31 : vector<72x128xf32>
    %cst_14 = arith.constant dense<0.000000e+00> : vector<128xf32>
    %37 = vector.multi_reduction <add>, %36, %cst_14 [0] : vector<72x128xf32> to vector<128xf32>
    %38 = vector.shape_cast %37 : vector<128xf32> to vector<1x128xf32>
    %39 = vector.shape_cast %38 : vector<1x128xf32> to vector<1x1x128xf32>
    %c0_15 = arith.constant 0 : index
    %c0_16 = arith.constant 0 : index
    %c0_17 = arith.constant 0 : index
    %40 = vector.load %arg6[%c0_15, %c0_16, %c0_17] : memref<1x1x128xf32, #tpu.memory_space<vmem>>, vector<1x1x128xf32>
    tpu.vector_store %arg6[%c0_15, %c0_16, %c0_17], %39 {strides = array<i32>} : memref<1x1x128xf32, #tpu.memory_space<vmem>>, vector<1x1x128xf32>,
    %41 = arith.truncf %8 : vector<72x128xf32> to vector<72x128xbf16>
    %c0_18 = arith.constant 0 : index
    %c0_19 = arith.constant 0 : index
    %42 = vector.load %arg4[%c0_18, %c0_19] : memref<72x128xbf16, #tpu.memory_space<vmem>>, vector<72x128xbf16>
    tpu.vector_store %arg4[%c0_18, %c0_19], %41 {strides = array<i32>} : memref<72x128xbf16, #tpu.memory_space<vmem>>, vector<72x128xbf16>,
    return
  }
  func.func @transform_0(%arg0: i32) -> (i32, i32) {
    %c0_i32 = arith.constant 0 : i32
    %c0_i32_0 = arith.constant 0 : i32
    return %arg0, %c0_i32 : i32, i32
  }
  func.func @transform_1(%arg0: i32) -> (i32, i32) {
    %c0_i32 = arith.constant 0 : i32
    %c0_i32_0 = arith.constant 0 : i32
    %c0_i32_1 = arith.constant 0 : i32
    return %c0_i32, %c0_i32_0 : i32, i32
  }
  func.func @transform_2(%arg0: i32) -> (i32, i32) {
    %c0_i32 = arith.constant 0 : i32
    %c0_i32_0 = arith.constant 0 : i32
    %c0_i32_1 = arith.constant 0 : i32
    return %c0_i32, %c0_i32_0 : i32, i32
  }
  func.func @transform_3(%arg0: i32) -> (i32, i32) {
    %c0_i32 = arith.constant 0 : i32
    %c0_i32_0 = arith.constant 0 : i32
    return %arg0, %c0_i32 : i32, i32
  }
  func.func @transform_4(%arg0: i32) -> (i32, i32, i32) {
    %c0_i32 = arith.constant 0 : i32
    %c0_i32_0 = arith.constant 0 : i32
    %c0_i32_1 = arith.constant 0 : i32
    return %arg0, %c0_i32, %c0_i32_0 : i32, i32, i32
  }
  func.func @transform_5(%arg0: i32) -> (i32, i32, i32) {
    %c0_i32 = arith.constant 0 : i32
    %c0_i32_0 = arith.constant 0 : i32
    %c0_i32_1 = arith.constant 0 : i32
    return %arg0, %c0_i32, %c0_i32_0 : i32, i32, i32
  }
}

module attributes {stable_mosaic.version = 11 : i64} {
  func.func @_bn_lrelu_kernel(%arg0: i32, %arg1: memref<72x128xbf16, #tpu.memory_space<vmem>>, %arg2: memref<1x128xf32, #tpu.memory_space<vmem>>, %arg3: memref<1x128xf32, #tpu.memory_space<vmem>>, %arg4: memref<72x128xf32, #tpu.memory_space<vmem>>) attributes {dimension_semantics = [#tpu.dimension_semantics<parallel>], iteration_bounds = array<i64: 2>, scalar_prefetch = 0 : i64, scratch_operands = 0 : i64, tpu.core_type = #tpu.core_type<tc>, window_params = [{transform_indices = @transform_0, window_bounds = array<i64: 72, 128>}, {pipeline_mode = #tpu.pipeline_mode<synchronous>, transform_indices = @transform_1, window_bounds = array<i64: 1, 128>}, {pipeline_mode = #tpu.pipeline_mode<synchronous>, transform_indices = @transform_2, window_bounds = array<i64: 1, 128>}, {transform_indices = @transform_3, window_bounds = array<i64: 72, 128>}]} {
    %c0 = arith.constant 0 : index
    %c0_0 = arith.constant 0 : index
    %0 = vector.load %arg1[%c0, %c0_0] : memref<72x128xbf16, #tpu.memory_space<vmem>>, vector<72x128xbf16>
    %1 = arith.extf %0 : vector<72x128xbf16> to vector<72x128xf32>
    %c0_1 = arith.constant 0 : index
    %c0_2 = arith.constant 0 : index
    %2 = vector.load %arg2[%c0_1, %c0_2] : memref<1x128xf32, #tpu.memory_space<vmem>>, vector<1x128xf32>
    %3 = vector.broadcast %2 : vector<1x128xf32> to vector<72x128xf32>
    %4 = arith.mulf %1, %3 : vector<72x128xf32>
    %c0_3 = arith.constant 0 : index
    %c0_4 = arith.constant 0 : index
    %5 = vector.load %arg3[%c0_3, %c0_4] : memref<1x128xf32, #tpu.memory_space<vmem>>, vector<1x128xf32>
    %6 = vector.broadcast %5 : vector<1x128xf32> to vector<72x128xf32>
    %7 = arith.addf %4, %6 : vector<72x128xf32>
    %cst = arith.constant 0.000000e+00 : f32
    %8 = vector.broadcast %cst : f32 to vector<72x128xf32>
    %9 = arith.cmpf oge, %7, %8 : vector<72x128xf32>
    %cst_5 = arith.constant 2.000000e-01 : f32
    %10 = vector.broadcast %cst_5 : f32 to vector<72x128xf32>
    %11 = arith.mulf %10, %7 : vector<72x128xf32>
    %12 = arith.select %9, %7, %11 : vector<72x128xi1>, vector<72x128xf32>
    %c0_6 = arith.constant 0 : index
    %c0_7 = arith.constant 0 : index
    %13 = vector.load %arg4[%c0_6, %c0_7] : memref<72x128xf32, #tpu.memory_space<vmem>>, vector<72x128xf32>
    tpu.vector_store %arg4[%c0_6, %c0_7], %12 {strides = array<i32>} : memref<72x128xf32, #tpu.memory_space<vmem>>, vector<72x128xf32>,
    return
  }
  func.func @transform_0(%arg0: i32) -> (i32, i32) {
    %c0_i32 = arith.constant 0 : i32
    %c0_i32_0 = arith.constant 0 : i32
    return %arg0, %c0_i32 : i32, i32
  }
  func.func @transform_1(%arg0: i32) -> (i32, i32) {
    %c0_i32 = arith.constant 0 : i32
    %c0_i32_0 = arith.constant 0 : i32
    %c0_i32_1 = arith.constant 0 : i32
    return %c0_i32, %c0_i32_0 : i32, i32
  }
  func.func @transform_2(%arg0: i32) -> (i32, i32) {
    %c0_i32 = arith.constant 0 : i32
    %c0_i32_0 = arith.constant 0 : i32
    %c0_i32_1 = arith.constant 0 : i32
    return %c0_i32, %c0_i32_0 : i32, i32
  }
  func.func @transform_3(%arg0: i32) -> (i32, i32) {
    %c0_i32 = arith.constant 0 : i32
    %c0_i32_0 = arith.constant 0 : i32
    return %arg0, %c0_i32 : i32, i32
  }
}

</mosaic_0001>

<bundles_post_ra>
// kernel: unet_down_forward.3
= control target key start
LH: loop header
LB: loop body
LE: loop exit
PB: predicated region body
PF: predicated region fallthrough
CT: control target
= control target key end

     0   :  { %s382_s12 = smov 0   ;;  %s438_s0 = inlined_call_operand.vmem [shape: bf16[144,128], index: 0, kind: input, shape index: {}]   ;;  %s439_s1 = inlined_call_operand.vmem [shape: f32[1,128], index: 1, kind: input, shape index: {}]   ;;  %s440_s2 = inlined_call_operand.vmem [shape: f32[1,128], index: 2, kind: input, shape index: {}]   ;;  %s441_s3 = inlined_call_operand.vmem [shape: f32[144,128], index: 3, kind: output, shape index: {}]  }
   0x1 LB: > { %s316_s13 = sadd.s32 4294967295, %s360_s12   ;;  %p320_p0 = scmp.ge.s32.totalorder %s360_s12, 1  ;;  %s360_s12 = sphi %s382_s12, %s13_s12  }
   0x2   : > { %p138_p1 = scmp.lt.s32.totalorder %s360_s12, 3 }
   0x4   : > { %p139_p2 = pnand %p320_p0, %p138_p1 }
   0x5   : > { %s162_s14 = smul.u32 (!%p139_p2), 9, %s316_s13  ;;  %v401_v0 = vld [vmem:[%s439_s1] ss:$0 sm:$0xff] (!%p139_p2) }
   0x6   : > { %142 = sbr.rel (%p139_p2) target bundleno = 38 (0x26), region = 32  ;;  %v324_v9 = vld [vmem:[%s440_s2] ss:$0 sm:$0xff] (!%p139_p2) }
   0x7   : > { %p163_p3 = scmp.lt.s32.totalorder (!%p139_p2), %s162_s14, 17 }
   0xd   : > { %s443_s14 = smov (!%p163_p3, %s162_s14), 17 }
   0xe   : > { %s321_s15 = sshll.u32 %s443_s14, 2  ;;  %s322_s23 = sshll.u32 %s443_s14, 3 }
   0xf   : > { %s396_s18 = scalar_lea.vmem %s438_s0, %s321_s15  ;;  %s422_s26 = scalar_lea.vmem %s441_s3, %s322_s23 }
  0x10   : > { %v328_v1 = vld [vmem:[%s396_s18] sm:$0xff]   ;;  %v343_v2 = vld [vmem:[%s396_s18 + $0x8] sm:$0xff]   ;;  %v344_v3 = vld [vmem:[%s396_s18 + $0x10] sm:$0xff]  }
  0x11   : > { %v329_v4 = vunpack.c.l.bf16 %v328_v1  ;;  %v330_v5 = vunpack.c.h.bf16 %v328_v1  ;;  %v333_v6 = vunpack.c.l.bf16 %v343_v2  ;;  %v334_v7 = vunpack.c.h.bf16 %v343_v2  ;;  %v345_v8 = vld [vmem:[%s396_s18 + $0x18] sm:$0xff]   ;;  %v182_v37 = vld [vmem:[%s396_s18 + $0x20] sm:$0xf] }
  0x12   : > { %v337_v10 = vunpack.c.l.bf16 %v344_v3  ;;  %v338_v11 = vunpack.c.h.bf16 %v344_v3  ;;  %v341_v12 = vunpack.c.l.bf16 %v345_v8  ;;  %v342_v13 = vunpack.c.h.bf16 %v345_v8 }
  0x13   : > { %v199_v14 = vmul.f32 %v329_v4, %v401_v0  ;;  %v200_v15 = vmul.f32 %v330_v5, %v401_v0  ;;  %v201_v16 = vmul.f32 %v333_v6, %v401_v0  ;;  %v202_v17 = vmul.f32 %v334_v7, %v401_v0 }
  0x14   : > { %v203_v18 = vmul.f32 %v337_v10, %v401_v0  ;;  %v204_v19 = vmul.f32 %v338_v11, %v401_v0  ;;  %v205_v20 = vmul.f32 %v341_v12, %v401_v0  ;;  %v206_v21 = vmul.f32 %v342_v13, %v401_v0 }
  0x15   : > { %v215_v22 = vadd.f32 %v324_v9, %v199_v14  ;;  %v216_v23 = vadd.f32 %v324_v9, %v200_v15  ;;  %v217_v24 = vadd.f32 %v324_v9, %v201_v16  ;;  %v218_v25 = vadd.f32 %v324_v9, %v202_v17 }
  0x16   : > { %v219_v26 = vadd.f32 %v324_v9, %v203_v18  ;;  %v220_v27 = vadd.f32 %v324_v9, %v204_v19  ;;  %v221_v28 = vadd.f32 %v324_v9, %v205_v20  ;;  %v222_v29 = vadd.f32 %v324_v9, %v206_v21 }
  0x17   : > { %vm224_vm0 = vcmp.ge.f32.partialorder %v215_v22, 0.0  ;;  %v233_v30 = vmul.f32 0.2, %v215_v22  ;;  %vm225_vm1 = vcmp.ge.f32.partialorder %v216_v23, 0.0  ;;  %v234_v31 = vmul.f32 0.2, %v216_v23 }
  0x18   : > { %vm226_vm2 = vcmp.ge.f32.partialorder %v217_v24, 0.0  ;;  %v235_v32 = vmul.f32 0.2, %v217_v24  ;;  %vm227_vm3 = vcmp.ge.f32.partialorder %v218_v25, 0.0  ;;  %v236_v33 = vmul.f32 0.2, %v218_v25 }
  0x19   : > { %v242_v34 = vsel %vm224_vm0, %v215_v22, %v233_v30  ;;  %v243_v35 = vsel %vm225_vm1, %v216_v23, %v234_v31  ;;  %vm228_vm4 = vcmp.ge.f32.partialorder %v219_v26, 0.0  ;;  %v237_v36 = vmul.f32 0.2, %v219_v26 }
  0x1a   : > { %251 = vst [vmem:[%s422_s26] sm:$0xff] %v242_v34  ;;  %252 = vst [vmem:[%s422_s26 + $0x8] sm:$0xff] %v243_v35  ;;  %v244_v38 = vsel %vm226_vm2, %v217_v24, %v235_v32  ;;  %v245_v39 = vsel %vm227_vm3, %v218_v25, %v236_v33  ;;  %vm229_vm5 = vcmp.ge.f32.partialorder %v220_v27, 0.0  ;;  %v238_v40 = vmul.f32 0.2, %v220_v27 }
  0x1b   : > { %253 = vst [vmem:[%s422_s26 + $0x10] sm:$0xff] %v244_v38  ;;  %254 = vst [vmem:[%s422_s26 + $0x18] sm:$0xff] %v245_v39  ;;  %v246_v41 = vsel %vm228_vm4, %v219_v26, %v237_v36  ;;  %vm230_vm6 = vcmp.ge.f32.partialorder %v221_v28, 0.0  ;;  %v239_v42 = vmul.f32 0.2, %v221_v28  ;;  %vm231_vm7 = vcmp.ge.f32.partialorder %v222_v29, 0.0 }
  0x1c   : > { %255 = vst [vmem:[%s422_s26 + $0x20] sm:$0xff] %v246_v41  ;;  %v247_v43 = vsel %vm229_vm5, %v220_v27, %v238_v40  ;;  %v240_v44 = vmul.f32 0.2, %v222_v29  ;;  %v191_v45 = vunpack.c.l.bf16 %v182_v37 }
  0x1d   : > { %256 = vst [vmem:[%s422_s26 + $0x28] sm:$0xff] %v247_v43  ;;  %v248_v46 = vsel %vm230_vm6, %v221_v28, %v239_v42 }
  0x1e   : > { %257 = vst [vmem:[%s422_s26 + $0x30] sm:$0xff] %v248_v46  ;;  %v249_v47 = vsel %vm231_vm7, %v222_v29, %v240_v44  ;;  %v207_v48 = vmul.f32 %v401_v0, %v191_v45 }
  0x1f   : > { %258 = vst [vmem:[%s422_s26 + $0x38] sm:$0xff] %v249_v47 }
  0x20   : > { %v223_v49 = vadd.f32 %v324_v9, %v207_v48 }
  0x22   : > { %vm232_vm8 = vcmp.ge.f32.partialorder %v223_v49, 0.0  ;;  %v241_v50 = vmul.f32 0.2, %v223_v49 }
  0x24   : > { %v250_v51 = vsel %vm232_vm8, %v223_v49, %v241_v50 }
  0x25   : > { %259 = vst [vmem:[%s422_s26 + $0x40] sm:$0xff] %v250_v51 }
  0x26 PF: > { %s13_s12 = sadd.s32 1, %s360_s12  }
  0x27   : > { %p10_p4 = scmp.ge.s32.totalorder %s13_s12, 4  }
  0x29   :  { %12 = sbr.rel (!%p10_p4) target bundleno = 1 (0x1), region = 62 }

// kernel: unet_down_forward.2
= control target key start
LH: loop header
LB: loop body
LE: loop exit
PB: predicated region body
PF: predicated region fallthrough
CT: control target
= control target key end

     0   :  { %s1097_s18 = smov 0   ;;  %s1365_s0 = inlined_call_operand.vmem [shape: bf16[144,32], index: 0, kind: input, shape index: {}]   ;;  %s1366_s1 = inlined_call_operand.vmem [shape: bf16[32,128], index: 1, kind: input, shape index: {}]   ;;  %s1367_s2 = inlined_call_operand.vmem [shape: bf16[32,128], index: 2, kind: input, shape index: {}]   ;;  %s1368_s3 = inlined_call_operand.vmem [shape: bf16[144,128], index: 3, kind: output, shape index: {0}]   ;;  %s1369_s4 = inlined_call_operand.vmem [shape: f32[2,1,128], index: 4, kind: output, shape index: {1}]   ;;  %s1370_s5 = inlined_call_operand.vmem [shape: f32[2,1,128], index: 5, kind: output, shape index: {2}]  }
   0x1 LB: > { %s1103_s19 = sadd.s32 4294967295, %s1063_s18   ;;  %p893_p0 = scmp.ge.s32.totalorder %s1063_s18, 1  ;;  %s1063_s18 = sphi %s1097_s18, %s16_s18  }
   0x2   : > { %p193_p1 = scmp.lt.s32.totalorder %s1063_s18, 3 }
   0x4   : > { %p194_p2 = pnand %p893_p0, %p193_p1 }
   0x5   : > { %v1048_v0 = vld [vmem:[%s1367_s2] sm:$0xff] (!%p194_p2)   ;;  %v1065_v1 = vmov (!%p194_p2), 0.0   ;;  %v1050_v3 = vld [vmem:[%s1367_s2 + $0x8] sm:$0xff] (!%p194_p2)   ;;  %vm1066_vm0 = vmmov (!%p194_p2), 0   ;;  %s227_s26 = smul.u32 (!%p194_p2), 9, %s1103_s19  ;;  %vm298_vm1 = vcmask (!%p194_p2), 261120   ;;  %v508_v10 = vlaneseq (!%p194_p2) }
   0x6   : > { %197 = sbr.rel (%p194_p2) target bundleno = 286 (0x11e), region = 32  ;;  %972 = vmatprep.subr.bf16.mxu0 (!%p194_p2), %v1065_v1  ;;  %996 = vmatprep.subr.bf16.mxu1 (!%p194_p2), %v1065_v1  ;;  %v1049_v2 = vld [vmem:[%s1366_s1] sm:$0xff] (!%p194_p2)   ;;  %v1051_v4 = vld [vmem:[%s1366_s1 + $0x8] sm:$0xff] (!%p194_p2)   ;;  %vm395_vm6 = vcmask (!%p194_p2), 1046528   ;;  %p239_p4 = scmp.lt.s32.totalorder (!%p194_p2), %s1103_s19, 1 }
   0x7   : > { %973 = vmatpush3.bf16.msra.mxu0 (!%p194_p2), %v1048_v0  ;;  %976 = vmatprep.mubr.msk.bf16.mxu0 (!%p194_p2), %vm1066_vm0, %v1065_v1  ;;  %p228_p3 = scmp.lt.s32.totalorder (!%p194_p2), %s227_s26, 17  ;;  %v509_v11 = vshrl.u32 (!%p194_p2), %v508_v10, 7 }
   0x8   : > { %997 = vmatpush3.bf16.msra.mxu1 (!%p194_p2), %v1049_v2  ;;  %974 = vmatprep.subr.bf16.mxu0 (!%p194_p2), %v1065_v1 }
   0x9   : > { %998 = vmatprep.subr.bf16.mxu1 (!%p194_p2), %v1065_v1  ;;  %1000 = vmatprep.mubr.msk.bf16.mxu1 (!%p194_p2), %vm1066_vm0, %v1065_v1  ;;  %v510_v12 = vadd.s32 (!%p194_p2), 8, %v509_v11  ;;  %v1148_v13 = vmul.u32.u64.low (!%p194_p2), 3817748708, %v509_v11  ;;  %v1149_v14 = vmul.u32.u64.high 3817748708, %v509_v11, %v1148_v13  ;;  %v511_v15 = vadd.s32 (!%p194_p2), 16, %v509_v11 }
   0xa   : > { %v512_v20 = vadd.s32 (!%p194_p2), 24, %v509_v11  ;;  %v513_v22 = vadd.s32 (!%p194_p2), 32, %v509_v11  ;;  %v1166_v30 = vadd.s32 (!%p194_p2), 40, %v509_v11  ;;  %v1169_v35 = vadd.s32 (!%p194_p2), 48, %v509_v11 }
   0xb   : > { %975 = vmatpush3.bf16.msra.mxu0 (!%p194_p2), %v1050_v3  ;;  %v1151_v16 = vmul.u32.u64.low (!%p194_p2), 3817748708, %v510_v12  ;;  %v1152_v17 = vmul.u32.u64.high 3817748708, %v510_v12, %v1151_v16  ;;  %v1154_v18 = vmul.u32.u64.low (!%p194_p2), 3817748708, %v511_v15  ;;  %v1155_v19 = vmul.u32.u64.high 3817748708, %v511_v15, %v1154_v18 }
   0xc   : > { %999 = vmatpush3.bf16.msra.mxu1 (!%p194_p2), %v1051_v4  ;;  %v524_v21 = vshrl.u32 (!%p194_p2), %v1149_v14, 3  ;;  %v1158_v23 = vmul.u32.u64.low (!%p194_p2), 3817748708, %v512_v20  ;;  %v1159_v24 = vmul.u32.u64.high 3817748708, %v512_v20, %v1158_v23  ;;  %v1184_v46 = vadd.s32 (!%p194_p2), 56, %v509_v11 }
   0xd   : > { %s1398_s26 = smov (!%p228_p3, %s227_s26), 17  ;;  %v535_v25 = vshrl.u32 %v1152_v17, 3  ;;  %v1162_v27 = vmul.u32.u64.low 3817748708, %v513_v22  ;;  %v1163_v28 = vmul.u32.u64.high 3817748708, %v513_v22, %v1162_v27  ;;  %v546_v29 = vshrl.u32 %v1155_v19, 3  ;;  %s1400_s19 = smov (!%p239_p4, %s1103_s19), 1 }
   0xe   : > { %s894_s29 = sshll.u32 %s1398_s26, 2  ;;  %v525_v26 = vmul.u32 9, %v524_v21  ;;  %v557_v34 = vshrl.u32 %v1159_v24, 3  ;;  %v1172_v36 = vmul.u32.u64.low 3817748708, %v1166_v30  ;;  %v1173_v37 = vmul.u32.u64.high 3817748708, %v1166_v30, %v1172_v36  ;;  %s241_s13 = scalar_lea.vmem %s1369_s4, %s1400_s19 }
   0xf   : > { %s231_s7 = scalar_lea.vmem %s1365_s0, %s894_s29  ;;  %v536_v31 = vmul.u32 9, %v535_v25  ;;  %v547_v33 = vmul.u32 9, %v546_v29  ;;  %v568_v39 = vshrl.u32 %v1163_v28, 3  ;;  %v1192_v55 = vadd.s32 64, %v509_v11  ;;  %s1265_s10 = scalar_lea.vmem %s1368_s3, %s894_s29 }
  0x10   : > { %v1052_v5 = vld [vmem:[%s231_s7] sm:$0xff]   ;;  %v1053_v6 = vld [vmem:[%s231_s7 + $0x8] sm:$0xff]   ;;  %v1054_v7 = vld [vmem:[%s231_s7 + $0x10] sm:$0xff]   ;;  %v526_v32 = vsub.s32 %v509_v11, %v525_v26  ;;  %v558_v41 = vmul.u32 9, %v557_v34  ;;  %v1179_v42 = vmul.u32.u64.low 3817748708, %v1169_v35  ;;  %v1180_v43 = vmul.u32.u64.high 3817748708, %v1169_v35, %v1179_v42  ;;  %s244_s16 = scalar_lea.vmem %s1370_s5, %s1400_s19 }
  0x11   : > { %977 = vmatmul.mubr.msk.bf16.vlgmr.msra.gmra.mrb[0].mxu0 %vm298_vm1, %v1052_v5  ;;  %1001 = vmatmul.mubr.msk.bf16.vlgmr.msra.gmra.mrb[0].mxu1 %vm298_vm1, %v1052_v5  ;;  %v1055_v8 = vld [vmem:[%s231_s7 + $0x18] sm:$0xff]   ;;  %v1056_v9 = vld [vmem:[%s231_s7 + $0x20] ss:$0 sps:$4 sm:$0xff]   ;;  %v537_v38 = vsub.s32 %v510_v12, %v536_v31  ;;  %v1176_v40 = vsub.s32 %v511_v15, %v547_v33  ;;  %v569_v54 = vmul.u32 9, %v568_v39  ;;  %v579_v62 = vshrl.u32 %v1173_v37, 3 }
  0x12   : > { %980 = vmatprep.mubr.msk.bf16.mxu0 %vm1066_vm0, %v1065_v1  ;;  %1004 = vmatprep.mubr.msk.bf16.mxu1 %vm1066_vm0, %v1065_v1  ;;  %vm617_vm2 = vcmp.ne.s32.totalorder %v526_v32, 0  ;;  %vm626_vm3 = vcmp.lt.s32.totalorder %v526_v32, 0  ;;  %v644_v48 = vadd.s32 9, %v526_v32  ;;  %v1196_v60 = vsub.s32 %v512_v20, %v558_v41 }
  0x13   : > { %vm618_vm4 = vcmp.ne.s32.totalorder %v537_v38, 0  ;;  %vm627_vm5 = vcmp.lt.s32.totalorder %v537_v38, 0  ;;  %vm1188_vm7 = vmand %vm626_vm3, %vm617_vm2  ;;  %v645_v53 = vadd.s32 9, %v537_v38  ;;  %vm619_vm8 = vcmp.ne.s32.totalorder %v1176_v40, 0 }
  0x14   : > { %vm628_vm9 = vcmp.lt.s32.totalorder %v1176_v40, 0  ;;  %vm1201_vm10 = vmand %vm627_vm5, %vm618_vm4  ;;  %v1207_v63 = vmul.u32.u64.low 3817748708, %v1184_v46  ;;  %v1208_v0 = vmul.u32.u64.high 3817748708, %v1184_v46, %v1207_v63  ;;  %v653_v2 = vsel %vm1188_vm7, %v644_v48, %v526_v32 }
  0x15   : > { %v646_v3 = vadd.s32 9, %v1176_v40  ;;  %v1216_v5 = vsub.s32 %v513_v22, %v569_v54  ;;  %vm1222_vm11 = vmand %vm628_vm9, %vm619_vm8  ;;  %vm620_vm12 = vcmp.ne.s32.totalorder %v1196_v60, 0  ;;  %vm629_vm13 = vcmp.lt.s32.totalorder %v1196_v60, 0 }
  0x16   : > { %v590_v10 = vshrl.u32 %v1180_v43, 3  ;;  %v580_v13 = vmul.u32 9, %v579_v62  ;;  %vm1231_vm14 = vcmp.ne.s32.totalorder %v653_v2, 8  ;;  %v647_v18 = vadd.s32 9, %v1196_v60 }
  0x17   : > { %v655_v20 = vsel %vm1222_vm11, %v646_v3, %v1176_v40  ;;  %vm630_vm2 = vcmp.lt.s32.totalorder %v1216_v5, 0  ;;  %v601_v33 = vshrl.u32 %v1208_v0, 3  ;;  %v648_v36 = vadd.s32 9, %v1216_v5 }
  0x18   : > { %v591_v28 = vmul.u32 9, %v590_v10  ;;  %v1257_v32 = vsub.s32 %v1166_v30, %v580_v13  ;;  %vm664_vm3 = vcmp.ne.s32.totalorder %v655_v20, 8 }
  0x19   : > { %981 = vmatmul.mubr.msk.bf16.gmra.mrb[4].mxu0 %vm298_vm1, %v1053_v6  ;;  %1005 = vmatmul.mubr.msk.bf16.gmra.mrb[4].mxu1 %vm298_vm1, %v1053_v6  ;;  %v602_v51 = vmul.u32 9, %v601_v33 }
  0x1a   : > { %984 = vmatprep.mubr.msk.bf16.mxu0 %vm1066_vm0, %v1065_v1  ;;  %1008 = vmatprep.mubr.msk.bf16.mxu1 %vm1066_vm0, %v1065_v1  ;;  %vm622_vm5 = vcmp.ne.s32.totalorder %v1257_v32, 0  ;;  %vm631_vm7 = vcmp.lt.s32.totalorder %v1257_v32, 0 }
  0x1b   : > { %vm1304_vm11 = vmand %vm631_vm7, %vm622_vm5 }
  0x21   : > { %985 = vmatmul.mubr.msk.bf16.gmra.mrb[8].mxu0 %vm298_vm1, %v1054_v7  ;;  %1009 = vmatmul.mubr.msk.bf16.gmra.mrb[8].mxu1 %vm298_vm1, %v1054_v7  ;;  %v1219_v6 = vmul.u32.u64.low 3817748708, %v1192_v55  ;;  %v1220_v7 = vmul.u32.u64.high 3817748708, %v1192_v55, %v1219_v6 }
  0x22   : > { %988 = vmatprep.mubr.msk.bf16.mxu0 %vm1066_vm0, %v1065_v1  ;;  %1012 = vmatprep.mubr.msk.bf16.mxu1 %vm1066_vm0, %v1065_v1  ;;  %v649_v6 = vadd.s32 9, %v1257_v32 }
  0x23   : > { %v612_v40 = vshrl.u32 %v1220_v7, 3 }
  0x25   : > { %v613_v63 = vmul.u32 9, %v612_v40 }
  0x27   : > { %v614_v14 = vsub.s32 %v1192_v55, %v613_v63 }
  0x29   : > { %989 = vmatmul.mubr.msk.bf16.gmra.mrb[12].mxu0 %vm298_vm1, %v1055_v8  ;;  %1013 = vmatmul.mubr.msk.bf16.gmra.mrb[12].mxu1 %vm298_vm1, %v1055_v8  ;;  %v603_v8 = vsub.s32 %v1184_v46, %v602_v51  ;;  %v658_v46 = vsel %vm1304_vm11, %v649_v6, %v1257_v32 }
  0x2a   : > { %992 = vmatprep.mubr.msk.bf16.mxu0 %vm1066_vm0, %v1065_v1  ;;  %1016 = vmatprep.mubr.msk.bf16.mxu1 %vm1066_vm0, %v1065_v1  ;;  %vm621_vm0 = vcmp.ne.s32.totalorder %v1216_v5, 0 }
  0x2b   : > { %vm1279_vm4 = vmand %vm630_vm2, %vm621_vm0  ;;  %vm1325_vm0 = vcmp.ne.s32.totalorder %v658_v46, 8  ;;  %vm634_vm2 = vcmp.lt.s32.totalorder %v614_v14, 0 }
  0x31   : > { %993 = vmatmul.mubr.msk.bf16.gmra.mrb[16].mxu0 %vm298_vm1, %v1056_v9  ;;  %1017 = vmatmul.mubr.msk.bf16.gmra.mrb[16].mxu1 %vm298_vm1, %v1056_v9  ;;  %v654_v9 = vsel %vm1201_vm10, %v645_v53, %v537_v38  ;;  %vm1248_vm1 = vmand %vm629_vm13, %vm620_vm12 }
  0x32   : > { %vm1239_vm15 = vcmp.ne.s32.totalorder %v654_v9, 8  ;;  %v656_v37 = vsel %vm1248_vm1, %v647_v18, %v1196_v60  ;;  %vm625_vm1 = vcmp.ne.s32.totalorder %v614_v14, 0 }
  0x33   : > { %vm1292_vm8 = vcmp.ne.s32.totalorder %v656_v37, 8  ;;  %v651_v37 = vadd.s32 9, %v603_v8  ;;  %vm1337_vm5 = vmand %vm634_vm2, %vm625_vm1 }
  0xe4   : > { %v1182_v44 = vpop.f32.mrb[0].mxu0  ;;  %v470_v45 = vpop.f32.mrb[0].mxu1 }
  0xe5   : > { %v978_v47 = vpop.f32.mrb[1].mxu0  ;;  %v1002_v49 = vpop.f32.mrb[1].mxu1  ;;  %v396_v56 = vrot.slane %v1182_v44, 1 }
  0xe6   : > { %v351_v50 = vpop.f32.mrb[2].mxu0  ;;  %v473_v52 = vpop.f32.mrb[2].mxu1  ;;  %v1284_v47 = vsub.s32 %v1169_v35, %v591_v28  ;;  %v657_v35 = vsel %vm1279_vm4, %v648_v36, %v1216_v5 }
  0xe7   : > { %v397_v57 = vrot.slane %v351_v50, 1  ;;  %v979_v58 = vpop.f32.mrb[3].mxu0  ;;  %v1003_v59 = vpop.f32.mrb[3].mxu1  ;;  %vm666_vm12 = vcmp.ne.s32.totalorder %v657_v35, 8 }
  0xe8   : > { %vm623_vm9 = vcmp.ne.s32.totalorder %v1284_v47, 0  ;;  %vm632_vm10 = vcmp.lt.s32.totalorder %v1284_v47, 0  ;;  %v650_v10 = vadd.s32 9, %v1284_v47 }
  0xe9   : > { %v398_v1 = vsel %vm395_vm6, %v396_v56, %v397_v57  ;;  %vm1314_vm13 = vmand %vm632_vm10, %vm623_vm9 }
  0xea   : > { %v471_v4 = vadd.f32 %v470_v45, %v398_v1 }
  0xec   : > { %v356_v11 = vpop.f32.mrb[4].mxu0  ;;  %v478_v12 = vpop.f32.mrb[4].mxu1  ;;  %v689_v29 = vsel %vm1231_vm14, %v471_v4, 0.0  ;;  %vm624_vm14 = vcmp.ne.s32.totalorder %v603_v8, 0 }
  0xed   : > { %v399_v15 = vrot.slane %v356_v11, 1  ;;  %v982_v16 = vpop.f32.mrb[5].mxu0  ;;  %v1006_v17 = vpop.f32.mrb[5].mxu1  ;;  %v713_v41 = vmul.f32 %v689_v29, %v689_v29 }
  0xee   : > { %v359_v19 = vpop.f32.mrb[6].mxu0  ;;  %v481_v22 = vpop.f32.mrb[6].mxu1 }
  0xef   : > { %v400_v24 = vsel %vm395_vm6, %v397_v57, %v399_v15  ;;  %v401_v25 = vrot.slane %v359_v19, 1  ;;  %v983_v26 = vpop.f32.mrb[7].mxu0  ;;  %v1007_v27 = vpop.f32.mrb[7].mxu1 }
  0xf0   : > { %v474_v31 = vadd.f32 %v473_v52, %v400_v24  ;;  %v659_v27 = vsel %vm1314_vm13, %v650_v10, %v1284_v47 }
  0xf1   : > { %v402_v34 = vsel %vm395_vm6, %v399_v15, %v401_v25  ;;  %vm668_vm4 = vcmp.ne.s32.totalorder %v659_v27, 8 }
  0xf2   : > { %v938_v30 = vpack.c.bf16 %v474_v31, %v471_v4  ;;  %v479_v38 = vadd.f32 %v478_v12, %v402_v34  ;;  %v690_v39 = vsel %vm1239_vm15, %v474_v31, 0.0  ;;  %vm633_vm15 = vcmp.lt.s32.totalorder %v603_v8, 0 }
  0xf3   : > { %v698_v42 = vadd.f32 %v690_v39, %v689_v29  ;;  %v714_v43 = vmul.f32 %v690_v39, %v690_v39  ;;  %v652_v39 = vadd.s32 9, %v614_v14 }
  0xf4   : > { %939 = vst [vmem:[%s1265_s10] sm:$0xff] %v938_v30   ;;  %v691_v48 = vsel %vm664_vm3, %v479_v38, 0.0  ;;  %v364_v49 = vpop.f32.mrb[8].mxu0  ;;  %v486_v50 = vpop.f32.mrb[8].mxu1  ;;  %vm1332_vm3 = vmand %vm633_vm15, %vm624_vm14 }
  0xf5   : > { %v699_v52 = vadd.f32 %v698_v42, %v691_v48  ;;  %v715_v53 = vmul.f32 %v691_v48, %v691_v48  ;;  %v722_v54 = vadd.f32 %v714_v43, %v713_v41  ;;  %v403_v57 = vrot.slane %v364_v49, 1  ;;  %v986_v58 = vpop.f32.mrb[9].mxu0  ;;  %v1010_v59 = vpop.f32.mrb[9].mxu1 }
  0xf6   : > { %v367_v60 = vpop.f32.mrb[10].mxu0  ;;  %v489_v62 = vpop.f32.mrb[10].mxu1  ;;  %v660_v49 = vsel %vm1332_vm3, %v651_v37, %v603_v8 }
  0xf7   : > { %v723_v0 = vadd.f32 %v722_v54, %v715_v53  ;;  %v404_v1 = vsel %vm395_vm6, %v401_v25, %v403_v57  ;;  %v405_v2 = vrot.slane %v367_v60, 1  ;;  %v987_v3 = vpop.f32.mrb[11].mxu0  ;;  %v1011_v4 = vpop.f32.mrb[11].mxu1  ;;  %v661_v53 = vsel %vm1337_vm5, %v652_v39, %v614_v14 }
  0xf8   : > { %v482_v7 = vadd.f32 %v481_v22, %v404_v1  ;;  %vm669_vm7 = vcmp.ne.s32.totalorder %v660_v49, 8 }
  0xf9   : > { %v406_v9 = vsel %vm395_vm6, %v403_v57, %v405_v2 }
  0xfa   : > { %v943_v11 = vpack.c.bf16 %v482_v7, %v479_v38  ;;  %v487_v12 = vadd.f32 %v486_v50, %v406_v9  ;;  %v692_v13 = vsel %vm1292_vm8, %v482_v7, 0.0  ;;  %vm670_vm8 = vcmp.ne.s32.totalorder %v661_v53, 8 }
  0xfb   : > { %v700_v15 = vadd.f32 %v699_v52, %v692_v13  ;;  %v716_v16 = vmul.f32 %v692_v13, %v692_v13 }
  0xfc   : > { %955 = vst [vmem:[%s1265_s10 + $0x8] sm:$0xff] %v943_v11   ;;  %v693_v18 = vsel %vm666_vm12, %v487_v12, 0.0  ;;  %v372_v19 = vpop.f32.mrb[12].mxu0  ;;  %v494_v20 = vpop.f32.mrb[12].mxu1 }
  0xfd   : > { %v701_v21 = vadd.f32 %v700_v15, %v693_v18  ;;  %v717_v22 = vmul.f32 %v693_v18, %v693_v18  ;;  %v724_v23 = vadd.f32 %v723_v0, %v716_v16  ;;  %v407_v55 = vrot.slane %v372_v19, 1  ;;  %v990_v24 = vpop.f32.mrb[13].mxu0  ;;  %v1014_v25 = vpop.f32.mrb[13].mxu1 }
  0xfe   : > { %v375_v26 = vpop.f32.mrb[14].mxu0  ;;  %v497_v29 = vpop.f32.mrb[14].mxu1 }
  0xff   : > { %v725_v31 = vadd.f32 %v724_v23, %v717_v22  ;;  %v408_v32 = vsel %vm395_vm6, %v405_v2, %v407_v55  ;;  %v409_v33 = vrot.slane %v375_v26, 1  ;;  %v991_v34 = vpop.f32.mrb[15].mxu0  ;;  %v1015_v36 = vpop.f32.mrb[15].mxu1 }
 0x100   : > { %v490_v30 = vadd.f32 %v489_v62, %v408_v32 }
 0x101   : > { %v410_v40 = vsel %vm395_vm6, %v407_v55, %v409_v33 }
 0x102   : > { %v948_v42 = vpack.c.bf16 %v490_v30, %v487_v12  ;;  %v495_v43 = vadd.f32 %v494_v20, %v410_v40  ;;  %v694_v45 = vsel %vm1325_vm0, %v490_v30, 0.0 }
 0x103   : > { %v702_v47 = vadd.f32 %v701_v21, %v694_v45  ;;  %v718_v48 = vmul.f32 %v694_v45, %v694_v45 }
 0x104   : > { %956 = vst [vmem:[%s1265_s10 + $0x10] sm:$0xff] %v948_v42   ;;  %v695_v50 = vsel %vm668_vm4, %v495_v43, 0.0  ;;  %v380_v51 = vpop.f32.mrb[16].mxu0  ;;  %v502_v52 = vpop.f32.mrb[16].mxu1 }
 0x105   : > { %v703_v54 = vadd.f32 %v702_v47, %v695_v50  ;;  %v719_v57 = vmul.f32 %v695_v50, %v695_v50  ;;  %v726_v58 = vadd.f32 %v725_v31, %v718_v48  ;;  %v411_v59 = vrot.slane %v380_v51, 1  ;;  %v994_v60 = vpop.f32.mrb[17].mxu0  ;;  %v1018_v35 = vpop.f32.mrb[17].mxu1 }
 0x106   : > { %v383_v61 = vpop.f32.mrb[18].mxu0  ;;  %v505_v62 = vpop.f32.mrb[18].mxu1 }
 0x107   : > { %v727_v63 = vadd.f32 %v726_v58, %v719_v57  ;;  %v412_v0 = vsel %vm395_vm6, %v409_v33, %v411_v59  ;;  %v423_v1 = vsel %vm395_vm6, %v411_v59, %v396_v56  ;;  %v995_v2 = vpop.f32.mrb[19].mxu0  ;;  %v1019_v3 = vpop.f32.mrb[19].mxu1 }
 0x108   : > { %v498_v4 = vadd.f32 %v497_v29, %v412_v0  ;;  %v503_v6 = vadd.f32 %v502_v52, %v423_v1 }
 0x10a   : > { %v953_v7 = vpack.c.bf16 %v498_v4, %v495_v43  ;;  %v696_v5 = vsel %vm669_vm7, %v498_v4, 0.0  ;;  %v697_v8 = vsel %vm670_vm8, %v503_v6, 0.0  ;;  %v934_v9 = vpack.c.bf16 %v503_v6, %v503_v6 }
 0x10b   : > { %v704_v10 = vadd.f32 %v703_v54, %v696_v5  ;;  %v720_v11 = vmul.f32 %v696_v5, %v696_v5  ;;  %v721_v13 = vmul.f32 %v697_v8, %v697_v8 }
 0x10c   : > { %957 = vst [vmem:[%s1265_s10 + $0x18] sm:$0xff] %v953_v7   ;;  %782 = vst [vmem:[%s1265_s10 + $0x20] sm:$0xf] %v934_v9 }
 0x10d   : > { %v705_v12 = vadd.f32 %v704_v10, %v697_v8  ;;  %v728_v44 = vadd.f32 %v727_v63, %v720_v11 }
 0x10f   : > { %v706_v14 = vrot.slane %v705_v12, 4  ;;  %v729_v56 = vadd.f32 %v728_v44, %v721_v13 }
 0x111   : > { %v707_v15 = vadd.f32 %v706_v14, %v705_v12  ;;  %v730_v16 = vrot.slane %v729_v56, 4 }
 0x113   : > { %v708_v17 = vrot.slane %v707_v15, 2  ;;  %v731_v46 = vadd.f32 %v730_v16, %v729_v56 }
 0x115   : > { %v709_v18 = vadd.f32 %v708_v17, %v707_v15  ;;  %v732_v19 = vrot.slane %v731_v46, 2 }
 0x117   : > { %v710_v20 = vrot.slane %v709_v18, 1  ;;  %v733_v21 = vadd.f32 %v732_v19, %v731_v46 }
 0x119   : > { %v711_v22 = vadd.f32 %v710_v20, %v709_v18  ;;  %v734_v23 = vrot.slane %v733_v21, 1 }
 0x11b   : > { %712 = vst [vmem:[%s241_s13] sm:$0x1] %v711_v22  ;;  %v735_v55 = vadd.f32 %v734_v23, %v733_v21 }
 0x11d   : > { %736 = vst [vmem:[%s244_s16] sm:$0x1] %v735_v55 }
 0x11e PF: > { %s16_s18 = sadd.s32 1, %s1063_s18  }
 0x11f   : > { %p13_p5 = scmp.ge.s32.totalorder %s16_s18, 4  }
 0x121   :  { %15 = sbr.rel (!%p13_p5) target bundleno = 1 (0x1), region = 86 }

</bundles_post_ra>
